<compile_context>
chip_gen: v6e
topology: v6e:2x2x1
jax: 0.10.0
libtpu: 0.0.40
codegen_flags: <defaults>
</compile_context>

<pallas_src>
import functools

import jax
import jax.numpy as jnp
from jax.experimental import pallas as pl
from jax.experimental.pallas import tpu as pltpu

LANE = 128
SUBLANE = 8
MAX_TM = 512
MAX_TK = 2048


def _round_up(x, m):
    return ((x + m - 1) // m) * m


def _choose_tiles(n):
    """Pick (tm, tk, n_pad): n_pad % tm == 0, n_pad % tk == 0, blocks (8,128)-legal."""
    if n < LANE:
        n_pad = _round_up(max(n, SUBLANE), SUBLANE)
        return n_pad, n_pad, n_pad
    n_pad = _round_up(n, LANE)
    # tk: largest multiple of 128 dividing n_pad, capped at MAX_TK.
    tk = LANE
    for cand in range(min(MAX_TK, n_pad), LANE - 1, -LANE):
        if n_pad % cand == 0:
            tk = cand
            break
    # tm: largest multiple of 8 dividing n_pad, capped at MAX_TM, and leaving at
    # least 2 row tiles when possible (v7x megacore).
    tm_cap = min(MAX_TM, n_pad // 2 if n_pad >= 2 * LANE else n_pad)
    tm = SUBLANE
    for cand in range(tm_cap, SUBLANE - 1, -SUBLANE):
        if n_pad % cand == 0:
            tm = cand
            break
    return tm, tk, n_pad


def _gcn_layer_kernel(a_ref, x_ref, d_ref, w_ref, b_ref, o_ref, acc_ref, *,
                      apply_relu, prescale_out, tk):
    """out_rows = [d *] [relu]( (d * sum_k A[i,k] @ X[k]) @ W + b )."""
    k = pl.program_id(1)

    @pl.when(k == 0)
    def _():
        acc_ref[...] = jnp.zeros_like(acc_ref)

    # Dominant O(N^2) aggregation: streamed bf16 A tile x resident bf16 X slab,
    # f32 accumulation on the MXU.
    start = pl.multiple_of(k * tk, tk)
    x_slab = x_ref[pl.ds(start, tk), :]
    acc_ref[...] += jnp.dot(a_ref[...], x_slab,
                            preferred_element_type=jnp.float32)

    @pl.when(k == pl.num_programs(1) - 1)
    def _():
        d = d_ref[...]                                   # (tm, 1) f32
        agg = (d * acc_ref[...]).astype(jnp.bfloat16)    # row-side D^-1/2
        y = jnp.dot(agg, w_ref[...],
                    preferred_element_type=jnp.float32) + b_ref[...]
        if apply_relu:
            y = jnp.maximum(y, 0.0)
        if prescale_out:
            # pre-fold the *next* layer's column scaling (D^-1/2 H)
            y = d * y
        o_ref[...] = y.astype(o_ref.dtype)


def _gcn_layer(a_p, x_p, d_p, w_p, b_p, *, relu, prescale_out, tm, tk, out_dtype):
    """a_p: [Np,Np] bf16 (A + I, un-normalized), x_p: [Np,Fin] bf16 (already
    column-scaled by D^-1/2), d_p: [Np,1] f32, w_p: [Fin,Fout] bf16, b_p: [1,Fout] f32."""
    n_pad = a_p.shape[0]
    f_in = x_p.shape[1]
    f_out = w_p.shape[1]
    grid = (n_pad // tm, n_pad // tk)

    flops = 2 * n_pad * n_pad * f_in + 2 * n_pad * f_in * f_out
    bytes_accessed = (a_p.size * a_p.dtype.itemsize
                      + x_p.size * x_p.dtype.itemsize        # resident: read once
                      + d_p.size * d_p.dtype.itemsize
                      + w_p.size * w_p.dtype.itemsize
                      + b_p.size * b_p.dtype.itemsize
                      + n_pad * f_out * jnp.dtype(out_dtype).itemsize)

    kernel = functools.partial(_gcn_layer_kernel, apply_relu=relu,
                               prescale_out=prescale_out, tk=tk)

    return pl.pallas_call(
        kernel,
        out_shape=jax.ShapeDtypeStruct((n_pad, f_out), out_dtype),
        grid_spec=pltpu.PrefetchScalarGridSpec(
            num_scalar_prefetch=0,
            grid=grid,
            in_specs=[
                pl.BlockSpec((tm, tk), lambda i, k: (i, k)),       # A tile (streamed)
                pl.BlockSpec((n_pad, f_in), lambda i, k: (0, 0)),  # X resident in VMEM
                pl.BlockSpec((tm, 1), lambda i, k: (i, 0)),        # d_inv_sqrt rows
                pl.BlockSpec((f_in, f_out), lambda i, k: (0, 0)),  # W (resident bf16)
                pl.BlockSpec((1, f_out), lambda i, k: (0, 0)),     # b (resident f32)
            ],
            out_specs=pl.BlockSpec((tm, f_out), lambda i, k: (i, 0)),
            scratch_shapes=[pltpu.VMEM((tm, f_in), jnp.float32)],
        ),
        compiler_params=pltpu.CompilerParams(
            dimension_semantics=("parallel", "arbitrary"),
            vmem_limit_bytes=48 * 1024 * 1024,
        ),
        cost_estimate=pl.CostEstimate(
            flops=flops, transcendentals=0, bytes_accessed=bytes_accessed),
    )(a_p, x_p, d_p, w_p, b_p)


def target_encoder_forward(x, edge_index, w1, b1, w2, b2, *, tm=None, tk=None):
    """x: [N, Fin] f32, edge_index: [2, E] int32.  Returns [N, OUT] f32."""
    n, f_in = x.shape
    hid = w1.shape[1]
    out_ch = w2.shape[1]

    tm_d, tk_d, n_pad = _choose_tiles(n)
    if tm is None or n_pad % tm or tm % SUBLANE:
        tm = tm_d
    if tk is None or n_pad % tk or (tk % LANE and tk != n_pad):
        tk = tk_d

    f_in_p = _round_up(f_in, LANE)
    hid_p = _round_up(hid, LANE)
    out_p = _round_up(out_ch, LANE)

    # ---- glue: raw (A + I) adjacency built directly as padded bf16 (exact for
    # small integer edge multiplicities).  Duplicate edges accumulate weight > 1,
    # same as PyG message aggregation.
    # TODO(synk): for large sparse graphs, replace the dense adjacency with an
    # edge-list gather/accumulate kernel driven by PrefetchScalarGridSpec.
    src, dst = edge_index[0], edge_index[1]
    adj_p = jnp.zeros((n_pad, n_pad), jnp.bfloat16)
    adj_p = adj_p.at[dst, src].add(jnp.ones(src.shape, jnp.bfloat16))
    diag = jnp.arange(n, dtype=jnp.int32)
    adj_p = adj_p.at[diag, diag].add(jnp.ones((n,), jnp.bfloat16))     # self-loops

    # degrees straight from the edge list (== row-sum of A + I), kept in f32
    deg = jnp.zeros((n,), jnp.float32).at[dst].add(1.0) + 1.0
    d_inv_sqrt = jnp.where(deg > 0, jax.lax.rsqrt(deg), 0.0)
    d_p = jnp.zeros((n_pad, 1), jnp.float32).at[:n, 0].set(d_inv_sqrt)

    # layer-1 input with the column-side D^-1/2 pre-folded, bf16, lane-padded
    x_s = (x * d_inv_sqrt[:, None]).astype(jnp.bfloat16)
    x_p = jnp.zeros((n_pad, f_in_p), jnp.bfloat16).at[:n, :f_in].set(x_s)

    w1_p = jnp.zeros((f_in_p, hid_p), jnp.bfloat16).at[:f_in, :hid].set(
        w1.astype(jnp.bfloat16))
    b1_p = jnp.zeros((1, hid_p), jnp.float32).at[:, :hid].set(b1.reshape(1, hid))
    w2_p = jnp.zeros((hid_p, out_p), jnp.bfloat16).at[:hid, :out_ch].set(
        w2.astype(jnp.bfloat16))
    b2_p = jnp.zeros((1, out_p), jnp.float32).at[:, :out_ch].set(
        b2.reshape(1, out_ch))

    # layer 1: emits D^-1/2 * relu(A_hat X W1 + b1)  (column scaling for layer 2)
    h_s = _gcn_layer(adj_p, x_p, d_p, w1_p, b1_p, relu=True, prescale_out=True,
                     tm=tm, tk=tk, out_dtype=jnp.bfloat16)
    # layer 2: Out = A_hat H W2 + b2
    out = _gcn_layer(adj_p, h_s, d_p, w2_p, b2_p, relu=False, prescale_out=False,
                     tm=tm, tk=tk, out_dtype=jnp.float32)

    return out[:n, :out_ch]


def target_encoder_reference(x, edge_index, w1, b1, w2, b2):
    """Pure-JAX f32 reference (PyG GCNConv x2)."""
    n = x.shape[0]
    src, dst = edge_index[0], edge_index[1]
    adj = jnp.zeros((n, n), jnp.float32).at[dst, src].add(1.0)
    adj = adj + jnp.eye(n, dtype=jnp.float32)
    deg = jnp.sum(adj, axis=1)
    d = jnp.where(deg > 0, 1.0 / jnp.sqrt(deg), 0.0)
    a_hat = d[:, None] * adj * d[None, :]
    h = jnp.maximum(a_hat @ (x @ w1) + b1, 0.0)
    return a_hat @ (h @ w2) + b2


def glorot(key, shape):
    fan_in, fan_out = shape
    limit = jnp.sqrt(6.0 / (fan_in + fan_out))
    return jax.random.uniform(key, shape, jnp.float32, -limit, limit)


def _ring_edges(n):
    src = jnp.arange(n, dtype=jnp.int32)
    dst = (src + 1) % n
    return jnp.stack([jnp.concatenate([src, dst]),
                      jnp.concatenate([dst, src])], axis=0)


if __name__ == "__main__":
    keys = jax.random.split(jax.random.PRNGKey(0), 6)

    # ---- test 1: tiny graph (single-tile path): N=16, in=8, hidden=16, out=8 ----
    N, IN_CH, HID_CH, OUT_CH = 16, 8, 16, 8
    x = jax.random.normal(keys[0], (N, IN_CH), jnp.float32)
    edge_index = _ring_edges(N)
    w1 = glorot(keys[1], (IN_CH, HID_CH))
    b1 = jnp.zeros((1, HID_CH), jnp.float32)
    w2 = glorot(keys[2], (HID_CH, OUT_CH))
    b2 = jnp.zeros((1, OUT_CH), jnp.float32)

    out = jax.jit(target_encoder_forward)(x, edge_index, w1, b1, w2, b2)
    jax.block_until_ready(out)
    ref = target_encoder_reference(x, edge_index, w1, b1, w2, b2)
    assert out.shape == (N, OUT_CH)
    assert jnp.all(jnp.isfinite(out))
    assert jnp.allclose(out, ref, atol=5e-2, rtol=5e-2), float(
        jnp.max(jnp.abs(out - ref)))

    # ---- test 2: multi-tile path (grid (2,2)) exercising the k-reduction and the
    # resident-X dynamic slab slice; small tile override keeps shapes modest. ----
    N2, IN2, HID2, OUT2 = 200, 12, 16, 8
    x2 = jax.random.normal(keys[3], (N2, IN2), jnp.float32)
    edge_index2 = _ring_edges(N2)
    w1b = glorot(keys[4], (IN2, HID2))
    b1b = jnp.zeros((1, HID2), jnp.float32)
    w2b = glorot(keys[5], (HID2, OUT2))
    b2b = jnp.zeros((1, OUT2), jnp.float32)

    fwd_small_tiles = jax.jit(
        functools.partial(target_encoder_forward, tm=128, tk=128))
    out2 = fwd_small_tiles(x2, edge_index2, w1b, b1b, w2b, b2b)
    jax.block_until_ready(out2)
    ref2 = target_encoder_reference(x2, edge_index2, w1b, b1b, w2b, b2b)
    assert out2.shape == (N2, OUT2)
    assert jnp.all(jnp.isfinite(out2))
    assert jnp.allclose(out2, ref2, atol=5e-2, rtol=5e-2), float(
        jnp.max(jnp.abs(out2 - ref2)))

    print("KERNEL_OK")
</pallas_src>

<mosaic_0001>
module attributes {stable_mosaic.version = 11 : i64} {
  func.func private @main(%arg0: i32) attributes {dimension_semantics = [#tpu.dimension_semantics<core_parallel>], iteration_bounds = array<i64: 2>, tpu.core_type = #tpu.core_type<sc_scalar_subcore>, window_params = []} {
    return
  }
}

module attributes {stable_mosaic.version = 11 : i64} {
  func.func private @main(%arg0: i32) attributes {dimension_semantics = [#tpu.dimension_semantics<core_parallel>], iteration_bounds = array<i64: 2>, tpu.core_type = #tpu.core_type<sc_scalar_subcore>, window_params = []} {
    return
  }
}

module attributes {stable_mosaic.version = 11 : i64} {
  func.func @_gcn_layer_kernel(%arg0: i32, %arg1: i32, %arg2: memref<16x16xbf16, #tpu.memory_space<vmem>>, %arg3: memref<16x128xbf16, #tpu.memory_space<vmem>>, %arg4: memref<16x1xf32, #tpu.memory_space<vmem>>, %arg5: memref<128x128xbf16, #tpu.memory_space<vmem>>, %arg6: memref<1x128xf32, #tpu.memory_space<vmem>>, %arg7: memref<16x128xbf16, #tpu.memory_space<vmem>>, %arg8: memref<16x128xf32, #tpu.memory_space<vmem>>) attributes {dimension_semantics = [#tpu.dimension_semantics<parallel>, #tpu.dimension_semantics<arbitrary>], iteration_bounds = array<i64: 1, 1>, scalar_prefetch = 0 : i64, scratch_operands = 1 : i64, tpu.core_type = #tpu.core_type<tc>, window_params = [{transform_indices = @transform_0, window_bounds = array<i64: 16, 16>}, {pipeline_mode = #tpu.pipeline_mode<synchronous>, transform_indices = @transform_1, window_bounds = array<i64: 16, 128>}, {transform_indices = @transform_2, window_bounds = array<i64: 16, 1>}, {pipeline_mode = #tpu.pipeline_mode<synchronous>, transform_indices = @transform_3, window_bounds = array<i64: 128, 128>}, {pipeline_mode = #tpu.pipeline_mode<synchronous>, transform_indices = @transform_4, window_bounds = array<i64: 1, 128>}, {transform_indices = @transform_5, window_bounds = array<i64: 16, 128>}]} {
    %c0_i32 = arith.constant 0 : i32
    %0 = arith.cmpi eq, %arg1, %c0_i32 : i32
    %1 = arith.extui %0 : i1 to i32
    %c0_i32_0 = arith.constant 0 : i32
    %2 = arith.cmpi ne, %1, %c0_i32_0 : i32
    scf.if %2 {
      %cst_9 = arith.constant 0.000000e+00 : f32
      %15 = vector.broadcast %cst_9 : f32 to vector<16x128xf32>
      %c0_10 = arith.constant 0 : index
      %c0_11 = arith.constant 0 : index
      %16 = vector.load %arg8[%c0_10, %c0_11] : memref<16x128xf32, #tpu.memory_space<vmem>>, vector<16x128xf32>
      tpu.vector_store %arg8[%c0_10, %c0_11], %15 {strides = array<i32>} : memref<16x128xf32, #tpu.memory_space<vmem>>, vector<16x128xf32>,
    } else {
    }
    %c16_i32 = arith.constant 16 : i32
    %3 = arith.muli %arg1, %c16_i32 : i32
    %4 = tpu.assume_multiple %3, 16 : i32
    %5 = arith.index_cast %4 : i32 to index
    %c0 = arith.constant 0 : index
    %6 = vector.load %arg3[%5, %c0] : memref<16x128xbf16, #tpu.memory_space<vmem>>, vector<16x128xbf16>
    %c0_1 = arith.constant 0 : index
    %c0_2 = arith.constant 0 : index
    %7 = vector.load %arg8[%c0_1, %c0_2] : memref<16x128xf32, #tpu.memory_space<vmem>>, vector<16x128xf32>
    %c0_3 = arith.constant 0 : index
    %c0_4 = arith.constant 0 : index
    %8 = vector.load %arg2[%c0_3, %c0_4] : memref<16x16xbf16, #tpu.memory_space<vmem>>, vector<16x16xbf16>
    %cst = arith.constant dense<0.000000e+00> : vector<16x128xf32>
    %9 = tpu.matmul %8, %6, %cst {dimension_numbers = #tpu.dot_dimension_numbers<[1], [0], [0], [1], [0, 0, 1, 1], [], []>} : vector<16x16xbf16>, vector<16x128xbf16>, vector<16x128xf32> -> vector<16x128xf32>
    %10 = arith.addf %7, %9 : vector<16x128xf32>
    %c0_5 = arith.constant 0 : index
    %c0_6 = arith.constant 0 : index
    %11 = vector.load %arg8[%c0_5, %c0_6] : memref<16x128xf32, #tpu.memory_space<vmem>>, vector<16x128xf32>
    tpu.vector_store %arg8[%c0_5, %c0_6], %10 {strides = array<i32>} : memref<16x128xf32, #tpu.memory_space<vmem>>, vector<16x128xf32>,
    %c0_i32_7 = arith.constant 0 : i32
    %12 = arith.cmpi eq, %arg1, %c0_i32_7 : i32
    %13 = arith.extui %12 : i1 to i32
    %c0_i32_8 = arith.constant 0 : i32
    %14 = arith.cmpi ne, %13, %c0_i32_8 : i32
    scf.if %14 {
      %c0_9 = arith.constant 0 : index
      %c0_10 = arith.constant 0 : index
      %15 = vector.load %arg4[%c0_9, %c0_10] : memref<16x1xf32, #tpu.memory_space<vmem>>, vector<16x1xf32>
      %c0_11 = arith.constant 0 : index
      %c0_12 = arith.constant 0 : index
      %16 = vector.load %arg8[%c0_11, %c0_12] : memref<16x128xf32, #tpu.memory_space<vmem>>, vector<16x128xf32>
      %17 = vector.broadcast %15 : vector<16x1xf32> to vector<16x128xf32>
      %18 = arith.mulf %17, %16 : vector<16x128xf32>
      %19 = arith.truncf %18 : vector<16x128xf32> to vector<16x128xbf16>
      %c0_13 = arith.constant 0 : index
      %c0_14 = arith.constant 0 : index
      %20 = vector.load %arg5[%c0_13, %c0_14] : memref<128x128xbf16, #tpu.memory_space<vmem>>, vector<128x128xbf16>
      %cst_15 = arith.constant dense<0.000000e+00> : vector<16x128xf32>
      %21 = tpu.matmul %19, %20, %cst_15 {dimension_numbers = #tpu.dot_dimension_numbers<[1], [0], [0], [1], [0, 0, 1, 1], [], []>} : vector<16x128xbf16>, vector<128x128xbf16>, vector<16x128xf32> -> vector<16x128xf32>
      %c0_16 = arith.constant 0 : index
      %c0_17 = arith.constant 0 : index
      %22 = vector.load %arg6[%c0_16, %c0_17] : memref<1x128xf32, #tpu.memory_space<vmem>>, vector<1x128xf32>
      %23 = vector.broadcast %22 : vector<1x128xf32> to vector<16x128xf32>
      %24 = arith.addf %21, %23 : vector<16x128xf32>
      %cst_18 = arith.constant 0.000000e+00 : f32
      %25 = vector.broadcast %cst_18 : f32 to vector<16x128xf32>
      %26 = arith.maximumf %24, %25 : vector<16x128xf32>
      %27 = vector.broadcast %15 : vector<16x1xf32> to vector<16x128xf32>
      %28 = arith.mulf %27, %26 : vector<16x128xf32>
      %29 = arith.truncf %28 : vector<16x128xf32> to vector<16x128xbf16>
      %c0_19 = arith.constant 0 : index
      %c0_20 = arith.constant 0 : index
      %30 = vector.load %arg7[%c0_19, %c0_20] : memref<16x128xbf16, #tpu.memory_space<vmem>>, vector<16x128xbf16>
      tpu.vector_store %arg7[%c0_19, %c0_20], %29 {strides = array<i32>} : memref<16x128xbf16, #tpu.memory_space<vmem>>, vector<16x128xbf16>,
    } else {
    }
    return
  }
  func.func @transform_0(%arg0: i32, %arg1: i32) -> (i32, i32) {
    %c0_i32 = arith.constant 0 : i32
    return %arg0, %arg1 : i32, i32
  }
  func.func @transform_1(%arg0: i32, %arg1: i32) -> (i32, i32) {
    %c0_i32 = arith.constant 0 : i32
    %c0_i32_0 = arith.constant 0 : i32
    %c0_i32_1 = arith.constant 0 : i32
    return %c0_i32, %c0_i32_0 : i32, i32
  }
  func.func @transform_2(%arg0: i32, %arg1: i32) -> (i32, i32) {
    %c0_i32 = arith.constant 0 : i32
    %c0_i32_0 = arith.constant 0 : i32
    return %arg0, %c0_i32 : i32, i32
  }
  func.func @transform_3(%arg0: i32, %arg1: i32) -> (i32, i32) {
    %c0_i32 = arith.constant 0 : i32
    %c0_i32_0 = arith.constant 0 : i32
    %c0_i32_1 = arith.constant 0 : i32
    return %c0_i32, %c0_i32_0 : i32, i32
  }
  func.func @transform_4(%arg0: i32, %arg1: i32) -> (i32, i32) {
    %c0_i32 = arith.constant 0 : i32
    %c0_i32_0 = arith.constant 0 : i32
    %c0_i32_1 = arith.constant 0 : i32
    return %c0_i32, %c0_i32_0 : i32, i32
  }
  func.func @transform_5(%arg0: i32, %arg1: i32) -> (i32, i32) {
    %c0_i32 = arith.constant 0 : i32
    %c0_i32_0 = arith.constant 0 : i32
    return %arg0, %c0_i32 : i32, i32
  }
}

module attributes {stable_mosaic.version = 11 : i64} {
  func.func @_gcn_layer_kernel(%arg0: i32, %arg1: i32, %arg2: memref<16x16xbf16, #tpu.memory_space<vmem>>, %arg3: memref<16x128xbf16, #tpu.memory_space<vmem>>, %arg4: memref<16x1xf32, #tpu.memory_space<vmem>>, %arg5: memref<128x128xbf16, #tpu.memory_space<vmem>>, %arg6: memref<1x128xf32, #tpu.memory_space<vmem>>, %arg7: memref<16x128xf32, #tpu.memory_space<vmem>>, %arg8: memref<16x128xf32, #tpu.memory_space<vmem>>) attributes {dimension_semantics = [#tpu.dimension_semantics<parallel>, #tpu.dimension_semantics<arbitrary>], iteration_bounds = array<i64: 1, 1>, scalar_prefetch = 0 : i64, scratch_operands = 1 : i64, tpu.core_type = #tpu.core_type<tc>, window_params = [{transform_indices = @transform_0, window_bounds = array<i64: 16, 16>}, {pipeline_mode = #tpu.pipeline_mode<synchronous>, transform_indices = @transform_1, window_bounds = array<i64: 16, 128>}, {transform_indices = @transform_2, window_bounds = array<i64: 16, 1>}, {pipeline_mode = #tpu.pipeline_mode<synchronous>, transform_indices = @transform_3, window_bounds = array<i64: 128, 128>}, {pipeline_mode = #tpu.pipeline_mode<synchronous>, transform_indices = @transform_4, window_bounds = array<i64: 1, 128>}, {transform_indices = @transform_5, window_bounds = array<i64: 16, 128>}]} {
    %c0_i32 = arith.constant 0 : i32
    %0 = arith.cmpi eq, %arg1, %c0_i32 : i32
    %1 = arith.extui %0 : i1 to i32
    %c0_i32_0 = arith.constant 0 : i32
    %2 = arith.cmpi ne, %1, %c0_i32_0 : i32
    scf.if %2 {
      %cst_9 = arith.constant 0.000000e+00 : f32
      %15 = vector.broadcast %cst_9 : f32 to vector<16x128xf32>
      %c0_10 = arith.constant 0 : index
      %c0_11 = arith.constant 0 : index
      %16 = vector.load %arg8[%c0_10, %c0_11] : memref<16x128xf32, #tpu.memory_space<vmem>>, vector<16x128xf32>
      tpu.vector_store %arg8[%c0_10, %c0_11], %15 {strides = array<i32>} : memref<16x128xf32, #tpu.memory_space<vmem>>, vector<16x128xf32>,
    } else {
    }
    %c16_i32 = arith.constant 16 : i32
    %3 = arith.muli %arg1, %c16_i32 : i32
    %4 = tpu.assume_multiple %3, 16 : i32
    %5 = arith.index_cast %4 : i32 to index
    %c0 = arith.constant 0 : index
    %6 = vector.load %arg3[%5, %c0] : memref<16x128xbf16, #tpu.memory_space<vmem>>, vector<16x128xbf16>
    %c0_1 = arith.constant 0 : index
    %c0_2 = arith.constant 0 : index
    %7 = vector.load %arg8[%c0_1, %c0_2] : memref<16x128xf32, #tpu.memory_space<vmem>>, vector<16x128xf32>
    %c0_3 = arith.constant 0 : index
    %c0_4 = arith.constant 0 : index
    %8 = vector.load %arg2[%c0_3, %c0_4] : memref<16x16xbf16, #tpu.memory_space<vmem>>, vector<16x16xbf16>
    %cst = arith.constant dense<0.000000e+00> : vector<16x128xf32>
    %9 = tpu.matmul %8, %6, %cst {dimension_numbers = #tpu.dot_dimension_numbers<[1], [0], [0], [1], [0, 0, 1, 1], [], []>} : vector<16x16xbf16>, vector<16x128xbf16>, vector<16x128xf32> -> vector<16x128xf32>
    %10 = arith.addf %7, %9 : vector<16x128xf32>
    %c0_5 = arith.constant 0 : index
    %c0_6 = arith.constant 0 : index
    %11 = vector.load %arg8[%c0_5, %c0_6] : memref<16x128xf32, #tpu.memory_space<vmem>>, vector<16x128xf32>
    tpu.vector_store %arg8[%c0_5, %c0_6], %10 {strides = array<i32>} : memref<16x128xf32, #tpu.memory_space<vmem>>, vector<16x128xf32>,
    %c0_i32_7 = arith.constant 0 : i32
    %12 = arith.cmpi eq, %arg1, %c0_i32_7 : i32
    %13 = arith.extui %12 : i1 to i32
    %c0_i32_8 = arith.constant 0 : i32
    %14 = arith.cmpi ne, %13, %c0_i32_8 : i32
    scf.if %14 {
      %c0_9 = arith.constant 0 : index
      %c0_10 = arith.constant 0 : index
      %15 = vector.load %arg4[%c0_9, %c0_10] : memref<16x1xf32, #tpu.memory_space<vmem>>, vector<16x1xf32>
      %c0_11 = arith.constant 0 : index
      %c0_12 = arith.constant 0 : index
      %16 = vector.load %arg8[%c0_11, %c0_12] : memref<16x128xf32, #tpu.memory_space<vmem>>, vector<16x128xf32>
      %17 = vector.broadcast %15 : vector<16x1xf32> to vector<16x128xf32>
      %18 = arith.mulf %17, %16 : vector<16x128xf32>
      %19 = arith.truncf %18 : vector<16x128xf32> to vector<16x128xbf16>
      %c0_13 = arith.constant 0 : index
      %c0_14 = arith.constant 0 : index
      %20 = vector.load %arg5[%c0_13, %c0_14] : memref<128x128xbf16, #tpu.memory_space<vmem>>, vector<128x128xbf16>
      %cst_15 = arith.constant dense<0.000000e+00> : vector<16x128xf32>
      %21 = tpu.matmul %19, %20, %cst_15 {dimension_numbers = #tpu.dot_dimension_numbers<[1], [0], [0], [1], [0, 0, 1, 1], [], []>} : vector<16x128xbf16>, vector<128x128xbf16>, vector<16x128xf32> -> vector<16x128xf32>
      %c0_16 = arith.constant 0 : index
      %c0_17 = arith.constant 0 : index
      %22 = vector.load %arg6[%c0_16, %c0_17] : memref<1x128xf32, #tpu.memory_space<vmem>>, vector<1x128xf32>
      %23 = vector.broadcast %22 : vector<1x128xf32> to vector<16x128xf32>
      %24 = arith.addf %21, %23 : vector<16x128xf32>
      %c0_18 = arith.constant 0 : index
      %c0_19 = arith.constant 0 : index
      %25 = vector.load %arg7[%c0_18, %c0_19] : memref<16x128xf32, #tpu.memory_space<vmem>>, vector<16x128xf32>
      tpu.vector_store %arg7[%c0_18, %c0_19], %24 {strides = array<i32>} : memref<16x128xf32, #tpu.memory_space<vmem>>, vector<16x128xf32>,
    } else {
    }
    return
  }
  func.func @transform_0(%arg0: i32, %arg1: i32) -> (i32, i32) {
    %c0_i32 = arith.constant 0 : i32
    return %arg0, %arg1 : i32, i32
  }
  func.func @transform_1(%arg0: i32, %arg1: i32) -> (i32, i32) {
    %c0_i32 = arith.constant 0 : i32
    %c0_i32_0 = arith.constant 0 : i32
    %c0_i32_1 = arith.constant 0 : i32
    return %c0_i32, %c0_i32_0 : i32, i32
  }
  func.func @transform_2(%arg0: i32, %arg1: i32) -> (i32, i32) {
    %c0_i32 = arith.constant 0 : i32
    %c0_i32_0 = arith.constant 0 : i32
    return %arg0, %c0_i32 : i32, i32
  }
  func.func @transform_3(%arg0: i32, %arg1: i32) -> (i32, i32) {
    %c0_i32 = arith.constant 0 : i32
    %c0_i32_0 = arith.constant 0 : i32
    %c0_i32_1 = arith.constant 0 : i32
    return %c0_i32, %c0_i32_0 : i32, i32
  }
  func.func @transform_4(%arg0: i32, %arg1: i32) -> (i32, i32) {
    %c0_i32 = arith.constant 0 : i32
    %c0_i32_0 = arith.constant 0 : i32
    %c0_i32_1 = arith.constant 0 : i32
    return %c0_i32, %c0_i32_0 : i32, i32
  }
  func.func @transform_5(%arg0: i32, %arg1: i32) -> (i32, i32) {
    %c0_i32 = arith.constant 0 : i32
    %c0_i32_0 = arith.constant 0 : i32
    return %arg0, %c0_i32 : i32, i32
  }
}

</mosaic_0001>

<bundles_post_ra>
// kernel: target_encoder_forward.3
= control target key start
LH: loop header
LB: loop body
LE: loop exit
PB: predicated region body
PF: predicated region fallthrough
CT: control target
= control target key end

     0   :  { %v301_v0 = vmov 0.0   ;;  %vm302_vm0 = vmmov 0   ;;  %v303_v3 = vmov 0   ;;  %vm49_vm1 = vcmask 130048   ;;  %s379_s1 = inlined_call_operand.vmem [shape: bf16[16,128], index: 1, kind: input, shape index: {}]   ;;  %s380_s0 = inlined_call_operand.vmem [shape: bf16[16,16], index: 0, kind: input, shape index: {}]   ;;  %s381_s2 = inlined_call_operand.vmem [shape: f32[16,1], index: 2, kind: input, shape index: {}]   ;;  %s382_s3 = inlined_call_operand.vmem [shape: bf16[128,128], index: 3, kind: input, shape index: {}]   ;;  %s383_s4 = inlined_call_operand.vmem [shape: f32[1,128], index: 4, kind: input, shape index: {}]   ;;  %s384_s5 = inlined_call_operand.vmem [shape: f32[16,128], index: 5, kind: output, shape index: {}]  }
   0x1   :  { %261 = vmatprep.subr.bf16.mxu0 %v301_v0  ;;  %v291_v1 = vld [vmem:[%s379_s1] sm:$0xff]   ;;  %263 = vmatprep.mubr.msk.bf16.mxu0 %vm302_vm0, %v301_v0  ;;  %v293_v5 = vld [vmem:[%s382_s3 + $0x38] sm:$0xff]   ;;  %v102_v6 = vld [vmem:[%s381_s2 + $0x8] sm:$0xff] }
   0x2   :  { %v292_v2 = vld [vmem:[%s380_s0] sm:$0xff]   ;;  %290 = vset.pattern.permute.xlu0 %v303_v3  ;;  %267 = vmatprep.subr.bf16.mxu1 %v301_v0  ;;  %v294_v7 = vld [vmem:[%s382_s3 + $0x30] sm:$0xff]   ;;  %v295_v8 = vld [vmem:[%s382_s3 + $0x28] sm:$0xff]  }
   0x3   :  { %262 = vmatpush3.bf16.msra.mxu0 %v291_v1  ;;  %v101_v4 = vld [vmem:[%s381_s2] sm:$0xff]  ;;  %283 = vmatprep.mubr.msk.bf16.mxu1 %vm302_vm0, %v301_v0  ;;  %v297_v10 = vld [vmem:[%s382_s3 + $0x18] sm:$0xff]   ;;  %v298_v11 = vld [vmem:[%s382_s3 + $0x10] sm:$0xff]  }
   0x4   :  { %107 = vperm.xlu0 %290, %v101_v4   ;;  %268 = vmatpush3.bf16.msra.mxu1 %v293_v5  ;;  %v296_v9 = vld [vmem:[%s382_s3 + $0x20] sm:$0xff]   ;;  %v299_v12 = vld [vmem:[%s382_s3 + $0x8] sm:$0xff]  }
   0x5   :  { %269 = vmatprep.subr.bf16.mxu1 %v301_v0  ;;  %v300_v13 = vld [vmem:[%s382_s3] sm:$0xff]  }
   0x6   :  { %264 = vmatmul.mubr.msk.bf16.vlgmr.msra.gmra.mxu0 %vm49_vm1, %v292_v2  ;;  %v241_v23 = vld [vmem:[%s383_s4] ss:$0 sm:$0xff] }
   0x8   :  { %112 = vperm.xlu0 %290, %v102_v6   ;;  %270 = vmatpush3.bf16.msra.mxu1 %v294_v7 }
   0x9   :  { %271 = vmatprep.subr.bf16.mxu1 %v301_v0 }
   0xc   :  { %272 = vmatpush3.bf16.msra.mxu1 %v295_v8 }
   0xd   :  { %273 = vmatprep.subr.bf16.mxu1 %v301_v0 }
  0x10   :  { %274 = vmatpush3.bf16.msra.mxu1 %v296_v9 }
  0x11   :  { %275 = vmatprep.subr.bf16.mxu1 %v301_v0 }
  0x14   :  { %276 = vmatpush3.bf16.msra.mxu1 %v297_v10 }
  0x15   :  { %277 = vmatprep.subr.bf16.mxu1 %v301_v0 }
  0x18   :  { %278 = vmatpush3.bf16.msra.mxu1 %v298_v11 }
  0x19   :  { %279 = vmatprep.subr.bf16.mxu1 %v301_v0 }
  0x1c   :  { %280 = vmatpush3.bf16.msra.mxu1 %v299_v12 }
  0x1d   :  { %281 = vmatprep.subr.bf16.mxu1 %v301_v0 }
  0x20   :  { %282 = vmatpush3.bf16.msra.mxu1 %v300_v13 }
  0x7f   :  { %v108_v14 = vpop.permute.xlu0 %107 }
  0x83   :  { %v113_v17 = vpop.permute.xlu0 %112 }
  0xc6   :  { %v87_v15 = vpop.f32.mrf.mxu0 }
  0xc7   :  { %v115_v19 = vmul.f32 %v108_v14, %v87_v15 }
  0xc8   :  { %v265_v16 = vpop.f32.mrf.mxu0 }
  0xca   :  { %v90_v18 = vpop.f32.mrf.mxu0 }
  0xcb   :  { %v116_v20 = vmul.f32 %v113_v17, %v90_v18 }
  0xcc   :  { %v266_v21 = vpop.f32.mrf.mxu0 }
  0xcd   :  { %v117_v22 = vpack.c.bf16 %v116_v20, %v115_v19 }
  0xcf   :  { %284 = vmatmul.mubr.bf16.vlgmr.msra.gmra.mxu1 %v117_v22 }
 0x18f   :  { %v223_v24 = vpop.f32.mrf.mxu1 }
 0x190   :  { %v224_v25 = vadd.f32 %v241_v23, %v223_v24 }
 0x191   :  { %v285_v26 = vpop.f32.mrf.mxu1 }
 0x192   :  { %230 = vst [vmem:[%s384_s5] sm:$0xff] %v224_v25 }
 0x193   :  { %v226_v27 = vpop.f32.mrf.mxu1 }
 0x194   :  { %v227_v28 = vadd.f32 %v241_v23, %v226_v27 }
 0x195   :  { %v286_v29 = vpop.f32.mrf.mxu1 }
 0x196   :  { %231 = vst [vmem:[%s384_s5 + $0x8] sm:$0xff] %v227_v28 }

// kernel: target_encoder_forward.2
= control target key start
LH: loop header
LB: loop body
LE: loop exit
PB: predicated region body
PF: predicated region fallthrough
CT: control target
= control target key end

     0   :  { %v322_v0 = vmov 0.0   ;;  %vm323_vm0 = vmmov 0   ;;  %v324_v3 = vmov 0   ;;  %vm49_vm1 = vcmask 130048   ;;  %s397_s1 = inlined_call_operand.vmem [shape: bf16[16,128], index: 1, kind: input, shape index: {}]   ;;  %s398_s0 = inlined_call_operand.vmem [shape: bf16[16,16], index: 0, kind: input, shape index: {}]   ;;  %s399_s2 = inlined_call_operand.vmem [shape: f32[16,1], index: 2, kind: input, shape index: {}]   ;;  %s400_s3 = inlined_call_operand.vmem [shape: bf16[128,128], index: 3, kind: input, shape index: {}]   ;;  %s401_s4 = inlined_call_operand.vmem [shape: f32[1,128], index: 4, kind: input, shape index: {}]   ;;  %s402_s5 = inlined_call_operand.vmem [shape: bf16[16,128], index: 5, kind: output, shape index: {}]  }
   0x1   :  { %282 = vmatprep.subr.bf16.mxu0 %v322_v0  ;;  %v312_v1 = vld [vmem:[%s397_s1] sm:$0xff]   ;;  %284 = vmatprep.mubr.msk.bf16.mxu0 %vm323_vm0, %v322_v0  ;;  %v314_v5 = vld [vmem:[%s400_s3 + $0x38] sm:$0xff]   ;;  %v102_v6 = vld [vmem:[%s399_s2 + $0x8] sm:$0xff] }
   0x2   :  { %v313_v2 = vld [vmem:[%s398_s0] sm:$0xff]   ;;  %311 = vset.pattern.permute.xlu0 %v324_v3  ;;  %288 = vmatprep.subr.bf16.mxu1 %v322_v0  ;;  %v315_v7 = vld [vmem:[%s400_s3 + $0x30] sm:$0xff]   ;;  %v316_v8 = vld [vmem:[%s400_s3 + $0x28] sm:$0xff]  }
   0x3   :  { %283 = vmatpush3.bf16.msra.mxu0 %v312_v1  ;;  %v101_v4 = vld [vmem:[%s399_s2] sm:$0xff]  ;;  %304 = vmatprep.mubr.msk.bf16.mxu1 %vm323_vm0, %v322_v0  ;;  %v318_v10 = vld [vmem:[%s400_s3 + $0x18] sm:$0xff]   ;;  %v319_v11 = vld [vmem:[%s400_s3 + $0x10] sm:$0xff]  }
   0x4   :  { %107 = vperm.xlu0 %311, %v101_v4   ;;  %289 = vmatpush3.bf16.msra.mxu1 %v314_v5  ;;  %v317_v9 = vld [vmem:[%s400_s3 + $0x20] sm:$0xff]   ;;  %v320_v12 = vld [vmem:[%s400_s3 + $0x8] sm:$0xff]  }
   0x5   :  { %290 = vmatprep.subr.bf16.mxu1 %v322_v0  ;;  %v321_v13 = vld [vmem:[%s400_s3] sm:$0xff]  }
   0x6   :  { %285 = vmatmul.mubr.msk.bf16.vlgmr.msra.gmra.mxu0 %vm49_vm1, %v313_v2  ;;  %v253_v23 = vld [vmem:[%s401_s4] ss:$0 sm:$0xff] }
   0x8   :  { %112 = vperm.xlu0 %311, %v102_v6   ;;  %291 = vmatpush3.bf16.msra.mxu1 %v315_v7 }
   0x9   :  { %292 = vmatprep.subr.bf16.mxu1 %v322_v0 }
   0xc   :  { %293 = vmatpush3.bf16.msra.mxu1 %v316_v8 }
   0xd   :  { %294 = vmatprep.subr.bf16.mxu1 %v322_v0 }
  0x10   :  { %295 = vmatpush3.bf16.msra.mxu1 %v317_v9 }
  0x11   :  { %296 = vmatprep.subr.bf16.mxu1 %v322_v0 }
  0x14   :  { %297 = vmatpush3.bf16.msra.mxu1 %v318_v10 }
  0x15   :  { %298 = vmatprep.subr.bf16.mxu1 %v322_v0 }
  0x18   :  { %299 = vmatpush3.bf16.msra.mxu1 %v319_v11 }
  0x19   :  { %300 = vmatprep.subr.bf16.mxu1 %v322_v0 }
  0x1c   :  { %301 = vmatpush3.bf16.msra.mxu1 %v320_v12 }
  0x1d   :  { %302 = vmatprep.subr.bf16.mxu1 %v322_v0 }
  0x20   :  { %303 = vmatpush3.bf16.msra.mxu1 %v321_v13 }
  0x7f   :  { %v108_v14 = vpop.permute.xlu0 %107 }
  0x83   :  { %v113_v17 = vpop.permute.xlu0 %112 }
  0xc6   :  { %v87_v15 = vpop.f32.mrf.mxu0 }
  0xc7   :  { %v115_v19 = vmul.f32 %v108_v14, %v87_v15 }
  0xc8   :  { %v286_v16 = vpop.f32.mrf.mxu0 }
  0xca   :  { %v90_v18 = vpop.f32.mrf.mxu0 }
  0xcb   :  { %v116_v20 = vmul.f32 %v113_v17, %v90_v18 }
  0xcc   :  { %v287_v21 = vpop.f32.mrf.mxu0 }
  0xcd   :  { %v117_v22 = vpack.c.bf16 %v116_v20, %v115_v19 }
  0xcf   :  { %305 = vmatmul.mubr.bf16.vlgmr.msra.gmra.mxu1 %v117_v22 }
 0x18f   :  { %v223_v24 = vpop.f32.mrf.mxu1 }
 0x190   :  { %v224_v25 = vadd.f32 %v253_v23, %v223_v24 }
 0x191   :  { %v306_v26 = vpop.f32.mrf.mxu1 }
 0x192   :  { %v230_v28 = vmax.f32 %v224_v25, 0.0 }
 0x193   :  { %v226_v27 = vpop.f32.mrf.mxu1 }
 0x194   :  { %v227_v29 = vadd.f32 %v253_v23, %v226_v27  ;;  %v232_v32 = vmul.f32 %v230_v28, %v108_v14 }
 0x195   :  { %v307_v30 = vpop.f32.mrf.mxu1 }
 0x196   :  { %v231_v31 = vmax.f32 %v227_v29, 0.0 }
 0x198   :  { %v233_v33 = vmul.f32 %v231_v31, %v113_v17 }
 0x19a   :  { %v269_v34 = vpack.c.bf16 %v233_v33, %v232_v32 }
 0x19c   :  { %270 = vst [vmem:[%s402_s5] sm:$0xff] %v269_v34  }

</bundles_post_ra>
